<compile_context>
chip_gen: v5e
topology: v5e:2x2
jax: 0.10.0
libtpu: 0.0.40
codegen_flags: <defaults>
</compile_context>

<pallas_src>
import functools

import jax
import jax.numpy as jnp
import numpy as np
from jax.experimental import pallas as pl
from jax.experimental.pallas import tpu as pltpu


def _round_up(x, m):
    return ((x + m - 1) // m) * m


def _cdiv(a, b):
    return (a + b - 1) // b


def _choose_tile(b_lane, total_rows):
    """Pick a lane tile TB (multiple of 128) and grid length."""
    # Double-buffered VMEM footprint per grid step ~= 2 * total_rows * TB * 4 bytes.
    # 8 MiB budget is comfortably inside the default scoped VMEM on v5e/v6e (32 MiB)
    # and v7x (32 MiB of 64 MiB physical), while still allowing ~50K+ lane tiles.
    vmem_budget = 8 * 1024 * 1024
    bytes_per_lane = 2 * total_rows * 4
    cap = max(128, (vmem_budget // bytes_per_lane) // 128 * 128)

    n_tiles = _cdiv(b_lane, cap)
    # v7x has 2 TensorCores: with dimension_semantics=("parallel",) a >=2-step grid
    # shards the batch across both cores. Near-neutral on v5e/v6e, so only split
    # when the batch is big enough to amortize the ~0.35us per-step overhead.
    if n_tiles == 1 and b_lane >= 4096:
        n_tiles = 2
    tb = _round_up(_cdiv(b_lane, n_tiles), 128)
    n_tiles = _cdiv(b_lane, tb)
    return tb, n_tiles


def _sswe_loss_kernel(slab_ref, out_ref, *, alpha, n_corrupt):
    slab = slab_ref[...].astype(jnp.float32)          # (4+C, TB)
    true_sy = slab[0:1, :]                            # (1, TB)
    sem_t = slab[1:2, :]                              # (1, TB)
    sem_tr = slab[2:3, :]                             # (1, TB)
    labels = slab[3:4, :]                             # (1, TB)
    corrupt = slab[4:4 + n_corrupt, :]                # (C, TB)

    # Shared per-tile terms, computed once and broadcast over the C sublane rows.
    sem_base = (1.0 - alpha) * jnp.maximum(1.0 - (sem_t - sem_tr) * labels, 0.0)
    syn = jnp.maximum((1.0 - true_sy) + corrupt, 0.0)
    out_ref[...] = (alpha * syn + sem_base).astype(out_ref.dtype)


@functools.partial(jax.jit, static_argnames=("alpha", "size_average", "stream_bf16"))
def _sswe_loss_pallas(scores, labels, *, alpha, size_average, stream_bf16):
    true_sy, true_sem = scores[0]
    B = true_sy.shape[0]
    C = len(scores) - 1

    io_dtype = jnp.bfloat16 if stream_bf16 else jnp.float32

    # ---- marshal to one lane-dense slab: one concat + one transpose (fused by XLA) ----
    cols = [true_sy.reshape(B, 1), true_sem.reshape(B, 2), jnp.reshape(labels, (B, 1))]
    cols += [scores[i][0].reshape(B, 1) for i in range(1, C + 1)]
    slab = jnp.concatenate(cols, axis=1).astype(io_dtype).T        # (4+C, B)

    # ---- tiling: lanes padded to a 128 multiple; TB sized from VMEM budget ----
    B_lane = _round_up(B, 128)
    TB, n_tiles = _choose_tile(B_lane, total_rows=(4 + C) + C)
    B_pad = TB * n_tiles
    slab = jnp.pad(slab, ((0, 0), (0, B_pad - B)))                 # (4+C, B_pad)

    out = pl.pallas_call(
        functools.partial(_sswe_loss_kernel, alpha=float(alpha), n_corrupt=C),
        out_shape=jax.ShapeDtypeStruct((C, B_pad), io_dtype),
        grid=(n_tiles,),
        in_specs=[
            # sublane dim (4+C) equals the full array extent -> legal block shape.
            pl.BlockSpec((4 + C, TB), lambda i: (0, i)),
        ],
        out_specs=pl.BlockSpec((C, TB), lambda i: (0, i)),
        compiler_params=pltpu.CompilerParams(
            dimension_semantics=("parallel",),
            allow_input_fusion=[True],
        ),
    )(slab)

    # Lane-dense (C, B_pad) kernel output; strip padding and reshape only here to
    # mirror torch.cat([... (B,1) ...], dim=0) ordering.
    loss = out[:, :B].astype(jnp.float32).reshape(C * B, 1)
    if size_average:
        loss = jnp.mean(loss)
    return loss


def _reference(scores, labels, alpha=0.5, size_average=False):
    """Plain-JAX reference mirroring the PyTorch code (also the small-problem fast path)."""
    true_sy, true_sem = scores[0]
    delt = jnp.squeeze(labels)
    sem_loss = jnp.maximum(1.0 - (true_sem[:, 0] - true_sem[:, 1]) * delt, 0.0)[:, None]
    pieces = []
    for i in range(1, len(scores)):
        syn_loss = jnp.maximum(1.0 - true_sy + scores[i][0], 0.0)
        pieces.append(syn_loss * alpha + sem_loss * (1.0 - alpha))
    loss = jnp.concatenate(pieces, axis=0)
    if size_average:
        loss = jnp.mean(loss)
    return loss


def sswe_loss(scores, labels, alpha=0.5, size_average=False,
              stream_bf16=False, min_pallas_elems=1 << 16):
    """scores: list of (sy_score (B,1), sem_score (B,2)); labels: (B,1) or (B,)."""
    assert len(scores) >= 2
    B = scores[0][0].shape[0]
    C = len(scores) - 1

    # Small-problem fast path: a single fused XLA elementwise op beats the pallas_call
    # fixed costs (custom call, grid step, DMA) at tiny sizes.
    if B * (4 + 2 * C) < min_pallas_elems:
        return _reference(scores, labels, alpha=alpha, size_average=size_average)

    scores = tuple((sy, sem) for (sy, sem) in scores)
    return _sswe_loss_pallas(scores, labels, alpha=float(alpha),
                             size_average=bool(size_average),
                             stream_bf16=bool(stream_bf16))


def _make_inputs(key, B, C):
    keys = jax.random.split(key, 2 * (C + 1) + 1)
    scores = []
    for i in range(C + 1):
        sy = jax.random.normal(keys[2 * i], (B, 1), dtype=jnp.float32)
        sem = jax.random.normal(keys[2 * i + 1], (B, 2), dtype=jnp.float32)
        scores.append((sy, sem))
    labels = jnp.sign(
        jax.random.normal(keys[-1], (B, 1), dtype=jnp.float32)
    ).astype(jnp.float32)  # +/-1 sentiment labels
    return scores, labels


if __name__ == "__main__":
    # min_pallas_elems=0 in all cases so the Pallas kernel itself is exercised.

    # Small case matching the module's typical usage (B=8 batch, C=3 corrupt samples).
    scores, labels = _make_inputs(jax.random.PRNGKey(0), B=8, C=3)
    loss = jax.block_until_ready(
        sswe_loss(scores, labels, alpha=0.5, min_pallas_elems=0))
    ref = _reference(scores, labels, alpha=0.5)
    assert loss.shape == (3 * 8, 1), loss.shape
    np.testing.assert_allclose(np.asarray(loss), np.asarray(ref), rtol=1e-6, atol=1e-6)

    # Single full-width tile, no lane-padding waste (B=640 is already a 128 multiple).
    scores2, labels2 = _make_inputs(jax.random.PRNGKey(1), B=640, C=5)
    loss2 = jax.block_until_ready(
        sswe_loss(scores2, labels2, alpha=0.3, min_pallas_elems=0))
    ref2 = _reference(scores2, labels2, alpha=0.3)
    assert loss2.shape == (5 * 640, 1), loss2.shape
    np.testing.assert_allclose(np.asarray(loss2), np.asarray(ref2), rtol=1e-6, atol=1e-6)

    # Larger batch exercising the 2-step parallel grid path (v7x dual-TC friendly).
    scores3, labels3 = _make_inputs(jax.random.PRNGKey(2), B=4608, C=2)
    loss3 = jax.block_until_ready(
        sswe_loss(scores3, labels3, alpha=0.7, min_pallas_elems=0))
    ref3 = _reference(scores3, labels3, alpha=0.7)
    assert loss3.shape == (2 * 4608, 1), loss3.shape
    np.testing.assert_allclose(np.asarray(loss3), np.asarray(ref3), rtol=1e-6, atol=1e-6)

    # size_average=True path (mean over all C*B elements, matching torch.mean).
    loss_avg = jax.block_until_ready(
        sswe_loss(scores, labels, alpha=0.5, size_average=True, min_pallas_elems=0))
    ref_avg = _reference(scores, labels, alpha=0.5, size_average=True)
    np.testing.assert_allclose(np.asarray(loss_avg), np.asarray(ref_avg),
                               rtol=1e-6, atol=1e-6)

    # TODO(synk): stream_bf16=True halves HBM traffic on v6e/v7x but needs a looser
    # tolerance than the 1e-6 f32 reference check used here.
    print("KERNEL_OK")
</pallas_src>

<mosaic_0001>
module attributes {stable_mosaic.version = 11 : i64} {
  func.func @_sswe_loss_kernel(%arg0: i32, %arg1: memref<7x128xf32, #tpu.memory_space<vmem>>, %arg2: memref<3x128xf32, #tpu.memory_space<vmem>>) attributes {dimension_semantics = [#tpu.dimension_semantics<parallel>], iteration_bounds = array<i64: 1>, scalar_prefetch = 0 : i64, scratch_operands = 0 : i64, tpu.core_type = #tpu.core_type<tc>, window_params = [{transform_indices = @transform_0, window_bounds = array<i64: 7, 128>}, {transform_indices = @transform_1, window_bounds = array<i64: 3, 128>}]} {
    %c0 = arith.constant 0 : index
    %c0_0 = arith.constant 0 : index
    %0 = vector.load %arg1[%c0, %c0_0] : memref<7x128xf32, #tpu.memory_space<vmem>>, vector<7x128xf32>
    %1 = vector.extract_strided_slice %0 {offsets = [0, 0], sizes = [1, 128], strides = [1, 1]} : vector<7x128xf32> to vector<1x128xf32>
    %2 = vector.extract_strided_slice %0 {offsets = [1, 0], sizes = [1, 128], strides = [1, 1]} : vector<7x128xf32> to vector<1x128xf32>
    %3 = vector.extract_strided_slice %0 {offsets = [2, 0], sizes = [1, 128], strides = [1, 1]} : vector<7x128xf32> to vector<1x128xf32>
    %4 = vector.extract_strided_slice %0 {offsets = [3, 0], sizes = [1, 128], strides = [1, 1]} : vector<7x128xf32> to vector<1x128xf32>
    %5 = vector.extract_strided_slice %0 {offsets = [4, 0], sizes = [3, 128], strides = [1, 1]} : vector<7x128xf32> to vector<3x128xf32>
    %6 = arith.subf %2, %3 : vector<1x128xf32>
    %7 = arith.mulf %6, %4 : vector<1x128xf32>
    %cst = arith.constant 1.000000e+00 : f32
    %8 = vector.broadcast %cst : f32 to vector<1x128xf32>
    %9 = arith.subf %8, %7 : vector<1x128xf32>
    %cst_1 = arith.constant 0.000000e+00 : f32
    %10 = vector.broadcast %cst_1 : f32 to vector<1x128xf32>
    %11 = arith.maximumf %9, %10 : vector<1x128xf32>
    %cst_2 = arith.constant 5.000000e-01 : f32
    %12 = vector.broadcast %cst_2 : f32 to vector<1x128xf32>
    %13 = arith.mulf %12, %11 : vector<1x128xf32>
    %cst_3 = arith.constant 1.000000e+00 : f32
    %14 = vector.broadcast %cst_3 : f32 to vector<1x128xf32>
    %15 = arith.subf %14, %1 : vector<1x128xf32>
    %16 = vector.broadcast %15 : vector<1x128xf32> to vector<3x128xf32>
    %17 = arith.addf %16, %5 : vector<3x128xf32>
    %cst_4 = arith.constant 0.000000e+00 : f32
    %18 = vector.broadcast %cst_4 : f32 to vector<3x128xf32>
    %19 = arith.maximumf %17, %18 : vector<3x128xf32>
    %cst_5 = arith.constant 5.000000e-01 : f32
    %20 = vector.broadcast %cst_5 : f32 to vector<3x128xf32>
    %21 = arith.mulf %20, %19 : vector<3x128xf32>
    %22 = vector.broadcast %13 : vector<1x128xf32> to vector<3x128xf32>
    %23 = arith.addf %21, %22 : vector<3x128xf32>
    %c0_6 = arith.constant 0 : index
    %c0_7 = arith.constant 0 : index
    %24 = vector.load %arg2[%c0_6, %c0_7] : memref<3x128xf32, #tpu.memory_space<vmem>>, vector<3x128xf32>
    tpu.vector_store %arg2[%c0_6, %c0_7], %23 {strides = array<i32>} : memref<3x128xf32, #tpu.memory_space<vmem>>, vector<3x128xf32>,
    return
  }
  func.func @transform_0(%arg0: i32) -> (i32, i32) {
    %c0_i32 = arith.constant 0 : i32
    %c0_i32_0 = arith.constant 0 : i32
    return %c0_i32, %arg0 : i32, i32
  }
  func.func @transform_1(%arg0: i32) -> (i32, i32) {
    %c0_i32 = arith.constant 0 : i32
    %c0_i32_0 = arith.constant 0 : i32
    return %c0_i32, %arg0 : i32, i32
  }
}

</mosaic_0001>

<bundles_post_ra>
// kernel: _sswe_loss_pallas.2
= control target key start
LH: loop header
LB: loop body
LE: loop exit
PB: predicated region body
PF: predicated region fallthrough
CT: control target
= control target key end

     0   :  { %s71_s0 = inlined_call_operand.vmem [shape: f32[7,8], index: 0, kind: input, shape index: {}]   ;;  %s72_s1 = inlined_call_operand.<no memory space> [shape: f32[], index: 1, kind: input, shape index: {}]   ;;  %s73_s2 = inlined_call_operand.vmem [shape: f32[3,128], index: 2, kind: output, shape index: {}]  }
   0x1   :  { %v7_v0 = vstv %s72_s1 }
   0x2   :  { %v11_v1 = vlaneseq  ;;  %v10_v2 = vld [vmem:[%s71_s0] sm:$0x7f] }
   0x4   :  { %v12_v3 = vshrl.u32 %v11_v1, 7  ;;  %v17_v4 = vand.u32 127, %v11_v1 }
   0x6   :  { %vm14_vm0 = vcmp.lt.s32.totalorder %v12_v3, 7  ;;  %vm19_vm1 = vcmp.lt.s32.totalorder %v17_v4, 8 }
   0x7   :  { %v15_v5 = vsel %vm14_vm0, %v10_v2, %v7_v0 }
   0x8   :  { %v20_v6 = vsel %vm19_vm1, %v15_v5, %v7_v0 }
   0x9   :  { %23 = vst [vmem:[#allocation7] sm:$0xff] %v20_v6 }
  0x10   :  { %v24_v7 = vld [vmem:[#allocation7] sm:$0x7f] }
  0x11   :  { %v26_v8 = vrot.slane %v24_v7, 1  ;;  %v29_v9 = vrot.slane %v24_v7, 2  ;;  %v35_v10 = vsub.f32 1.0, %v24_v7 }
  0x13   :  { %v28_v11 = vsub.f32 %v24_v7, %v26_v8  ;;  %v36_v12 = vperm.slane %v35_v10, 0 }
  0x15   :  { %v31_v13 = vmul.f32 %v29_v9, %v28_v11  ;;  %v37_v14 = vadd.f32 %v36_v12, %v24_v7 }
  0x17   :  { %v32_v15 = vsub.f32 1.0, %v31_v13  ;;  %v38_v16 = vmax.f32 %v37_v14, 0.0 }
  0x19   :  { %v33_v17 = vmax.f32 %v32_v15, 0.0  ;;  %v39_v19 = vmul.f32 0.5, %v38_v16 }
  0x1b   :  { %v34_v18 = vmul.f32 0.5, %v33_v17 }
  0x1d   :  { %v40_v20 = vperm.slane %v34_v18, 1 }
  0x1f   :  { %v41_v21 = vadd.f32 %v40_v20, %v39_v19 }
  0x21   :  { %42 = vst [vmem:[%s73_s2 - $0x4] sm:$0x70] %v41_v21 }

</bundles_post_ra>
